<compile_context>
chip_gen: v6e
topology: v6e:2x2x1
jax: 0.10.0
libtpu: 0.0.40
codegen_flags: <defaults>
</compile_context>

<pallas_src>
import functools
import math

import jax
import jax.numpy as jnp
from jax.experimental import pallas as pl
from jax.experimental.pallas import tpu as pltpu


# ------------------------------ Pallas kernel ------------------------------ #
def _diffusion_embedding_kernel(t_ref, freq_ref, w_ref, b_ref, o_ref, *,
                                max_step, embed_dim, hidden_dim):
    """Unified integer/float-t diffusion embedding + complex 2-layer MLP.

    t_ref:    [B, 1]  f32 (integer-valued for the table-lookup path)
    freq_ref: [1, E]  f32 precomputed exp(-log(max_step) * arange(E) / E)
    w_ref:    [2E+2H, 2H] bf16  (layer-1 block stacked over layer-2 block)
    b_ref:    [2, 2H] f32  (row 0 = [b1r-b1i | b1r+b1i], row 1 = likewise b2)
    o_ref:    [B, 2H] f32  lane-dense [real | imag]
    """
    t = t_ref[...]                                        # [B, 1] f32
    freq = freq_ref[...]                                  # [1, E] f32

    # Embedding row(s): table[s] = [cos(s*freq), sin(s*freq)].  Lerp between
    # floor(t) and ceil(t) (clipped like jnp.take's clamp); for integer t the
    # frac is exactly 0 so this reduces to the plain table-lookup row.
    t_lo = jnp.floor(t)
    t_hi = jnp.ceil(t)
    frac = t - t_lo                                       # [B, 1]
    t_lo = jnp.clip(t_lo, 0.0, float(max_step - 1))
    t_hi = jnp.clip(t_hi, 0.0, float(max_step - 1))
    ph_lo = t_lo * freq                                   # [B, E]
    ph_hi = t_hi * freq                                   # [B, E]
    cos_lo, sin_lo = jnp.cos(ph_lo), jnp.sin(ph_lo)
    cos_hi, sin_hi = jnp.cos(ph_hi), jnp.sin(ph_hi)
    xr = cos_lo + frac * (cos_hi - cos_lo)                # real plane [B, E]
    xi = sin_lo + frac * (sin_hi - sin_lo)                # imag plane [B, E]
    x = jnp.concatenate([xr, xi], axis=-1)                # [B, 2E] lane-dense

    cd = w_ref.dtype
    w1 = w_ref[0:2 * embed_dim, :]                        # [2E, 2H] bf16 view
    w2 = w_ref[2 * embed_dim:2 * (embed_dim + hidden_dim), :]   # [2H, 2H]
    b = b_ref[...]                                        # [2, 2H] f32
    b1 = b[0:1, :]
    b2 = b[1:2, :]

    # ComplexLinear #1 as a single K=2E block matmul.
    h = jnp.dot(x.astype(cd), w1, preferred_element_type=jnp.float32) + b1
    # ComplexSiLU == SiLU per plane; planes are lane halves -> plain elementwise.
    h = h * jax.nn.sigmoid(h)                             # f32 (v5e-safe)
    # ComplexLinear #2 as a single 2H x 2H block matmul.
    o = jnp.dot(h.astype(cd), w2, preferred_element_type=jnp.float32) + b2
    o_ref[...] = o.astype(o_ref.dtype)


# --------------------------- pallas_call wrapper --------------------------- #
_VMEM = pl.BlockSpec(memory_space=pltpu.MemorySpace.VMEM)
_CPARAMS = pltpu.CompilerParams(vmem_limit_bytes=8 * 1024 * 1024)


def _cost_estimate(B, E, H):
    flops = 2 * B * (2 * E) * (2 * H) + 2 * B * (2 * H) * (2 * H)
    transcendentals = 4 * B * E + 2 * B * H               # cos/sin lo+hi, sigmoid
    bytes_accessed = ((2 * E + 2 * H) * (2 * H)) * 2      # bf16 weight slab
    bytes_accessed += 2 * (2 * H) * 4                     # f32 bias slab
    bytes_accessed += E * 4 + B * 4                       # freq + t
    bytes_accessed += B * (2 * H) * 4                     # output
    return pl.CostEstimate(flops=flops, transcendentals=transcendentals,
                           bytes_accessed=bytes_accessed)


def diffusion_embedding_forward(t, packed, *, max_step, embed_dim, hidden_dim):
    """t: [B] int (table lookup) or float (lerp). Returns lane-dense [B, 2H].

    Column layout of the result: [:, :H] = real plane, [:, H:] = imag plane.
    Use to_view_as_real() only if a downstream consumer truly needs [B, H, 2].
    """
    B = t.shape[0]
    t_f32 = t.astype(jnp.float32)[:, None]                # [B, 1]
    kernel = functools.partial(_diffusion_embedding_kernel,
                               max_step=max_step, embed_dim=embed_dim,
                               hidden_dim=hidden_dim)
    return pl.pallas_call(
        kernel,
        out_shape=jax.ShapeDtypeStruct((B, 2 * hidden_dim), jnp.float32),
        in_specs=[_VMEM] * 4,
        out_specs=_VMEM,
        compiler_params=_CPARAMS,
        cost_estimate=_cost_estimate(B, embed_dim, hidden_dim),
    )(t_f32, packed["freq"], packed["w"], packed["b"])


def to_view_as_real(out2h, hidden_dim):
    """Lane-dense [B, 2H] -> torch.view_as_real layout [B, H, 2]."""
    return jnp.stack([out2h[:, :hidden_dim], out2h[:, hidden_dim:]], axis=-1)


# ------------------------------- JAX glue ---------------------------------- #
def build_embedding(max_step, embed_dim):
    # table = steps * exp(-log(max_step) * dims / embed_dim)
    # embedding = view_as_real(exp(1j * table)) -> [..., 0]=cos, [..., 1]=sin
    steps = jnp.arange(max_step, dtype=jnp.float32)[:, None]
    dims = jnp.arange(embed_dim, dtype=jnp.float32)[None, :]
    table = steps * jnp.exp(-math.log(max_step) * dims / embed_dim)
    return jnp.stack([jnp.cos(table), jnp.sin(table)], axis=-1)  # [max_step, E, 2]


def init_params(key, embed_dim, hidden_dim):
    k1, k2, k3, k4 = jax.random.split(key, 4)
    std = 0.02
    # Stored already transposed vs. PyTorch ((in, out) instead of (out, in)).
    return {
        "w1r": std * jax.random.normal(k1, (embed_dim, hidden_dim), jnp.float32),
        "w1i": std * jax.random.normal(k2, (embed_dim, hidden_dim), jnp.float32),
        "b1r": jnp.zeros((1, hidden_dim), jnp.float32),
        "b1i": jnp.zeros((1, hidden_dim), jnp.float32),
        "w2r": std * jax.random.normal(k3, (hidden_dim, hidden_dim), jnp.float32),
        "w2i": std * jax.random.normal(k4, (hidden_dim, hidden_dim), jnp.float32),
        "b2r": jnp.zeros((1, hidden_dim), jnp.float32),
        "b2i": jnp.zeros((1, hidden_dim), jnp.float32),
    }


def pack_params(params, max_step, embed_dim, compute_dtype=jnp.bfloat16):
    """Fold both ComplexLinears into real block form, coalesced into one slab.

    w: [2E+2H, 2H] bf16 — rows 0..2E-1   = [[W1r, W1i], [-W1i, W1r]]
                          rows 2E..2E+2H = [[W2r, W2i], [-W2i, W2r]]
    b: [2, 2H]    f32  — row 0 = [b1r-b1i | b1r+b1i], row 1 = likewise for b2
    freq: [1, E]  f32  — exp(-log(max_step) * arange(E) / E)
    """
    w1r, w1i = params["w1r"], params["w1i"]
    w2r, w2i = params["w2r"], params["w2i"]
    w1_blk = jnp.concatenate(
        [jnp.concatenate([w1r, w1i], axis=1),
         jnp.concatenate([-w1i, w1r], axis=1)], axis=0)              # [2E, 2H]
    w2_blk = jnp.concatenate(
        [jnp.concatenate([w2r, w2i], axis=1),
         jnp.concatenate([-w2i, w2r], axis=1)], axis=0)              # [2H, 2H]
    w = jnp.concatenate([w1_blk, w2_blk], axis=0).astype(compute_dtype)
    b = jnp.concatenate(
        [jnp.concatenate([params["b1r"] - params["b1i"],
                          params["b1r"] + params["b1i"]], axis=1),
         jnp.concatenate([params["b2r"] - params["b2i"],
                          params["b2r"] + params["b2i"]], axis=1)], axis=0)
    dims = jnp.arange(embed_dim, dtype=jnp.float32)[None, :]
    freq = jnp.exp(-math.log(max_step) * dims / embed_dim)           # [1, E]
    return {"w": w, "b": b.astype(jnp.float32), "freq": freq}


# ------------------------- Pure-JAX f32 reference -------------------------- #
def _lerp_embedding(t, embedding, max_step):
    low = jnp.floor(t).astype(jnp.int32)
    high = jnp.clip(jnp.ceil(t).astype(jnp.int32), 0, max_step - 1)
    lo = jnp.take(embedding, low, axis=0)                 # jnp.take clamps low too
    hi = jnp.take(embedding, high, axis=0)
    frac = (t - low.astype(t.dtype))[:, None, None]
    return lo + (hi - lo) * frac                          # [B, E, 2]


def _reference_projection(x, params):
    """x: [B, E, 2]. Full-precision reference of the two ComplexLinears + SiLU."""
    xr, xi = x[..., 0], x[..., 1]

    def clin(xr, xi, wr, wi, br, bi):
        lr = lambda v: v @ wr + br
        li = lambda v: v @ wi + bi
        return lr(xr) - li(xi), lr(xi) + li(xr)

    hr, hi = clin(xr, xi, params["w1r"], params["w1i"], params["b1r"], params["b1i"])
    hr = hr * jax.nn.sigmoid(hr)
    hi = hi * jax.nn.sigmoid(hi)
    or_, oi_ = clin(hr, hi, params["w2r"], params["w2i"], params["b2r"], params["b2i"])
    return jnp.stack([or_, oi_], axis=-1)


if __name__ == "__main__":
    MAX_STEP = 50
    EMBED_DIM = 128
    HIDDEN_DIM = 128
    BATCH = 8   # note (v5e): bf16 LHS tile is [16,128]; batching t to 16 rows is free.

    key = jax.random.PRNGKey(0)
    k_t, k_p = jax.random.split(key)

    embedding = build_embedding(MAX_STEP, EMBED_DIM)      # reference table only
    params = init_params(k_p, EMBED_DIM, HIDDEN_DIM)
    packed = pack_params(params, MAX_STEP, EMBED_DIM)     # one weight slab, one bias slab, freq

    # ---- integer diffusion-step path (table-lookup semantics) ----
    t_int = jax.random.randint(k_t, (BATCH,), 0, MAX_STEP, dtype=jnp.int32)
    out_int = diffusion_embedding_forward(t_int, packed, max_step=MAX_STEP,
                                          embed_dim=EMBED_DIM, hidden_dim=HIDDEN_DIM)
    out_int = jax.block_until_ready(out_int)
    assert out_int.shape == (BATCH, 2 * HIDDEN_DIM), out_int.shape
    ref_int = _reference_projection(jnp.take(embedding, t_int, axis=0), params)
    got_int = to_view_as_real(out_int, HIDDEN_DIM)
    # bf16 matmul operands (f32 accumulate) -> looser tolerance vs f32 reference.
    assert jnp.allclose(got_int, ref_int, rtol=2e-2, atol=1e-3), \
        "integer-t path mismatch vs reference"

    # ---- float diffusion-step path (lerp semantics, same fused kernel) ----
    t_flt = t_int.astype(jnp.float32) + 0.37
    out_flt = diffusion_embedding_forward(t_flt, packed, max_step=MAX_STEP,
                                          embed_dim=EMBED_DIM, hidden_dim=HIDDEN_DIM)
    out_flt = jax.block_until_ready(out_flt)
    assert out_flt.shape == (BATCH, 2 * HIDDEN_DIM), out_flt.shape
    ref_flt = _reference_projection(_lerp_embedding(t_flt, embedding, MAX_STEP), params)
    got_flt = to_view_as_real(out_flt, HIDDEN_DIM)
    assert jnp.allclose(got_flt, ref_flt, rtol=2e-2, atol=1e-3), \
        "float-t (lerp) path mismatch vs reference"

    print("KERNEL_OK")
</pallas_src>

<mosaic_0001>
module attributes {stable_mosaic.version = 11 : i64} {
  func.func @_diffusion_embedding_kernel(%arg0: memref<8x1xf32, #tpu.memory_space<vmem>>, %arg1: memref<1x128xf32, #tpu.memory_space<vmem>>, %arg2: memref<512x256xbf16, #tpu.memory_space<vmem>>, %arg3: memref<2x256xf32, #tpu.memory_space<vmem>>, %arg4: memref<8x256xf32, #tpu.memory_space<vmem>>) attributes {dimension_semantics = [], scalar_prefetch = 0 : i64, scratch_operands = 0 : i64, tpu.core_type = #tpu.core_type<tc>} {
    %c0 = arith.constant 0 : index
    %c0_0 = arith.constant 0 : index
    %0 = vector.load %arg0[%c0, %c0_0] : memref<8x1xf32, #tpu.memory_space<vmem>>, vector<8x1xf32>
    %c0_1 = arith.constant 0 : index
    %c0_2 = arith.constant 0 : index
    %1 = vector.load %arg1[%c0_1, %c0_2] : memref<1x128xf32, #tpu.memory_space<vmem>>, vector<1x128xf32>
    %2 = math.floor %0 : vector<8x1xf32>
    %3 = math.ceil %0 : vector<8x1xf32>
    %4 = arith.subf %0, %2 : vector<8x1xf32>
    %cst = arith.constant 0.000000e+00 : f32
    %cst_3 = arith.constant 4.900000e+01 : f32
    %5 = vector.broadcast %cst : f32 to vector<8x1xf32>
    %6 = arith.maximumf %5, %2 : vector<8x1xf32>
    %7 = vector.broadcast %cst_3 : f32 to vector<8x1xf32>
    %8 = arith.minimumf %7, %6 : vector<8x1xf32>
    %cst_4 = arith.constant 0.000000e+00 : f32
    %cst_5 = arith.constant 4.900000e+01 : f32
    %9 = vector.broadcast %cst_4 : f32 to vector<8x1xf32>
    %10 = arith.maximumf %9, %3 : vector<8x1xf32>
    %11 = vector.broadcast %cst_5 : f32 to vector<8x1xf32>
    %12 = arith.minimumf %11, %10 : vector<8x1xf32>
    %13 = vector.broadcast %8 : vector<8x1xf32> to vector<8x128xf32>
    %14 = vector.broadcast %1 : vector<1x128xf32> to vector<8x128xf32>
    %15 = arith.mulf %13, %14 : vector<8x128xf32>
    %16 = vector.broadcast %12 : vector<8x1xf32> to vector<8x128xf32>
    %17 = vector.broadcast %1 : vector<1x128xf32> to vector<8x128xf32>
    %18 = arith.mulf %16, %17 : vector<8x128xf32>
    %19 = math.cos %15 : vector<8x128xf32>
    %20 = math.sin %15 : vector<8x128xf32>
    %21 = math.cos %18 : vector<8x128xf32>
    %22 = math.sin %18 : vector<8x128xf32>
    %23 = arith.subf %21, %19 : vector<8x128xf32>
    %24 = vector.broadcast %4 : vector<8x1xf32> to vector<8x128xf32>
    %25 = arith.mulf %24, %23 : vector<8x128xf32>
    %26 = arith.addf %19, %25 : vector<8x128xf32>
    %27 = arith.subf %22, %20 : vector<8x128xf32>
    %28 = vector.broadcast %4 : vector<8x1xf32> to vector<8x128xf32>
    %29 = arith.mulf %28, %27 : vector<8x128xf32>
    %30 = arith.addf %20, %29 : vector<8x128xf32>
    %31 = tpu.concatenate %26, %30 in 1 : vector<8x128xf32>, vector<8x128xf32> -> vector<8x256xf32>
    %c0_6 = arith.constant 0 : index
    %c0_7 = arith.constant 0 : index
    %32 = vector.load %arg2[%c0_6, %c0_7] : memref<512x256xbf16, #tpu.memory_space<vmem>>, vector<256x256xbf16>
    %c256 = arith.constant 256 : index
    %c0_8 = arith.constant 0 : index
    %33 = vector.load %arg2[%c256, %c0_8] : memref<512x256xbf16, #tpu.memory_space<vmem>>, vector<256x256xbf16>
    %c0_9 = arith.constant 0 : index
    %c0_10 = arith.constant 0 : index
    %34 = vector.load %arg3[%c0_9, %c0_10] : memref<2x256xf32, #tpu.memory_space<vmem>>, vector<2x256xf32>
    %35 = vector.extract_strided_slice %34 {offsets = [0, 0], sizes = [1, 256], strides = [1, 1]} : vector<2x256xf32> to vector<1x256xf32>
    %36 = vector.extract_strided_slice %34 {offsets = [1, 0], sizes = [1, 256], strides = [1, 1]} : vector<2x256xf32> to vector<1x256xf32>
    %37 = arith.truncf %31 : vector<8x256xf32> to vector<8x256xbf16>
    %cst_11 = arith.constant dense<0.000000e+00> : vector<8x256xf32>
    %38 = tpu.matmul %37, %32, %cst_11 {dimension_numbers = #tpu.dot_dimension_numbers<[1], [0], [0], [1], [0, 0, 1, 1], [], []>} : vector<8x256xbf16>, vector<256x256xbf16>, vector<8x256xf32> -> vector<8x256xf32>
    %39 = vector.broadcast %35 : vector<1x256xf32> to vector<8x256xf32>
    %40 = arith.addf %38, %39 : vector<8x256xf32>
    %41 = arith.negf %40 : vector<8x256xf32>
    %42 = math.exp %41 : vector<8x256xf32>
    %cst_12 = arith.constant 1.000000e+00 : f32
    %43 = vector.broadcast %cst_12 : f32 to vector<8x256xf32>
    %44 = arith.addf %43, %42 : vector<8x256xf32>
    %45 = arith.divf %43, %44 : vector<8x256xf32>
    %46 = arith.mulf %40, %45 : vector<8x256xf32>
    %47 = arith.truncf %46 : vector<8x256xf32> to vector<8x256xbf16>
    %cst_13 = arith.constant dense<0.000000e+00> : vector<8x256xf32>
    %48 = tpu.matmul %47, %33, %cst_13 {dimension_numbers = #tpu.dot_dimension_numbers<[1], [0], [0], [1], [0, 0, 1, 1], [], []>} : vector<8x256xbf16>, vector<256x256xbf16>, vector<8x256xf32> -> vector<8x256xf32>
    %49 = vector.broadcast %36 : vector<1x256xf32> to vector<8x256xf32>
    %50 = arith.addf %48, %49 : vector<8x256xf32>
    %c0_14 = arith.constant 0 : index
    %c0_15 = arith.constant 0 : index
    %51 = vector.load %arg4[%c0_14, %c0_15] : memref<8x256xf32, #tpu.memory_space<vmem>>, vector<8x256xf32>
    tpu.vector_store %arg4[%c0_14, %c0_15], %50 {strides = array<i32>} : memref<8x256xf32, #tpu.memory_space<vmem>>, vector<8x256xf32>,
    return
  }
}

</mosaic_0001>

<bundles_post_ra>
// kernel: tpu_custom_call.1
= control target key start
LH: loop header
LB: loop body
LE: loop exit
PB: predicated region body
PF: predicated region fallthrough
CT: control target
= control target key end

     0   :  { %9 = vsyncpa [#allocation3], 0  ;;  %s1411_s0 = inlined_call_operand.vmem [shape: f32[8,1], index: 0, kind: input, shape index: {}]   ;;  %s1412_s1 = inlined_call_operand.vmem [shape: f32[1,128], index: 1, kind: input, shape index: {}]   ;;  %s1413_s2 = inlined_call_operand.hbm [shape: bf16[512,256], index: 2, kind: input, shape index: {}]   ;;  %s1414_s3 = inlined_call_operand.vmem [shape: f32[2,256], index: 3, kind: input, shape index: {}]   ;;  %s1415_s4 = inlined_call_operand.hbm [shape: f32[8,256], index: 4, kind: output, shape index: {}]  }
   0x1   :  { %10 = vsyncpa [#allocation4], 0  ;;  %s1283_s15 = smov [#allocation2]  }
   0x2   :  { %s20_s16 = sshll.u32 %s1283_s15, 4  ;;  %s21_s16 = int_to_ptr.vmem [resolvable:$true] %s20_s16 }
   0x3   :  { %s1247_s17 = scalar_lea.vmem %s21_s16, 8192  ;;  %p1252_p1 = scmp.lt.s32.totalorder %s21_s16, %s21_s16 }
   0x4   :  { %p1248_p0 = scmp.ne.s32.totalorder %s21_s16, %s1247_s17  ;;  %p1253_p2 = scmp.lt.s32.totalorder %s1247_s17, %s1247_s17 }
   0x6   :  { %p1254_p3 = por %p1253_p2, %p1252_p1 }
   0x8   :  { %p1255_p4 = pnand %p1254_p3, %p1248_p0 }
   0xa   :  { %1258 = shalt.err (!%p1255_p4)
}
   0xb   :  { %s1284_s18 = smov 128   ;;  %s1285_s19 = smov 8  }
   0xc   :  { %26 = dma.hbm_to_vmem [thread:$0]  %s1413_s2, 8192, %s21_s16, [#allocation3], %s1284_s18, %s1284_s18, %s1285_s19  }
   0xd   :  { %1279 = dma.done.wait [#allocation3], 8192  }
   0xe   :  { %1280 = vsyncadd [#allocation3], 4294959104  ;;  %v1286_v0 = vmov 0   ;;  %v32_v1 = vld [vmem:[%s1411_s0] sm:$0xff]  ;;  %v1127_v9 = vld [vmem:[#allocation2 + $0x74] ss:$8 sps:$4 sm:$0xff]  }
   0xf   :  { %1125 = vset.pattern.permute.xlu0 %v1286_v0  ;;  %1126 = vset.pattern.permute.xlu1 %v1286_v0  ;;  %v34_v2 = vfloor.f32 %v32_v1  ;;  %v35_v3 = vceil.f32 %v32_v1  ;;  %v1129_v10 = vld [vmem:[#allocation2 + $0x70] ss:$8 sps:$4 sm:$0xff]   ;;  %v1130_v11 = vld [vmem:[#allocation2 + $0x64] ss:$8 sps:$4 sm:$0xff]   ;;  %v1132_v12 = vld [vmem:[#allocation2 + $0x60] ss:$8 sps:$4 sm:$0xff]  }
  0x10   :  { %730 = vmatprep.subr.bf16.mxu0 %v1127_v9  ;;  %v1133_v13 = vld [vmem:[#allocation2 + $0x54] ss:$8 sps:$4 sm:$0xff]   ;;  %v1135_v14 = vld [vmem:[#allocation2 + $0x50] ss:$8 sps:$4 sm:$0xff]   ;;  %v1136_v15 = vld [vmem:[#allocation2 + $0x44] ss:$8 sps:$4 sm:$0xff]  }
  0x11   :  { %v37_v4 = vmax.f32 %v34_v2, 0.0  ;;  %v39_v5 = vmax.f32 %v35_v3, 0.0  ;;  %v36_v6 = vsub.f32 %v32_v1, %v34_v2  ;;  %731 = vmatpush1.bf16.msra.mxu0 %v1129_v10  ;;  %v1138_v16 = vld [vmem:[#allocation2 + $0x40] ss:$8 sps:$4 sm:$0xff]   ;;  %v1139_v17 = vld [vmem:[#allocation2 + $0x34] ss:$8 sps:$4 sm:$0xff]  }
  0x12   :  { %732 = vmatprep.subr.bf16.mxu0 %v1130_v11  ;;  %v1141_v18 = vld [vmem:[#allocation2 + $0x30] ss:$8 sps:$4 sm:$0xff]   ;;  %v1142_v19 = vld [vmem:[#allocation2 + $0x24] ss:$8 sps:$4 sm:$0xff]   ;;  %v1144_v20 = vld [vmem:[#allocation2 + $0x20] ss:$8 sps:$4 sm:$0xff]  }
  0x13   :  { %v38_v7 = vmin.f32 %v37_v4, 49.0  ;;  %476 = vperm.xlu1 %1126, %v36_v6   ;;  %v40_v8 = vmin.f32 %v39_v5, 49.0  ;;  %v1145_v21 = vld [vmem:[#allocation2 + $0x14] ss:$8 sps:$4 sm:$0xff]   ;;  %v1147_v22 = vld [vmem:[#allocation2 + $0x10] ss:$8 sps:$4 sm:$0xff]  }
  0x14   :  { %v1148_v23 = vld [vmem:[#allocation2 + $0x4] ss:$8 sps:$4 sm:$0xff]   ;;  %v1150_v24 = vld [vmem:[#allocation2] ss:$8 sps:$4 sm:$0xff]   ;;  %v1151_v25 = vld [vmem:[#allocation2 + $0xf4] ss:$8 sps:$4 sm:$0xff]  }
  0x15   :  { %43 = vperm.xlu0 %1125, %v38_v7   ;;  %733 = vmatpush1.bf16.msra.mxu0 %v1132_v12  ;;  %v1153_v26 = vld [vmem:[#allocation2 + $0xf0] ss:$8 sps:$4 sm:$0xff]   ;;  %v1154_v27 = vld [vmem:[#allocation2 + $0xe4] ss:$8 sps:$4 sm:$0xff]   ;;  %v1156_v28 = vld [vmem:[#allocation2 + $0xe0] ss:$8 sps:$4 sm:$0xff]  }
  0x16   :  { %734 = vmatprep.subr.bf16.mxu0 %v1133_v13  ;;  %v1157_v29 = vld [vmem:[#allocation2 + $0xd4] ss:$8 sps:$4 sm:$0xff]   ;;  %v1159_v30 = vld [vmem:[#allocation2 + $0xd0] ss:$8 sps:$4 sm:$0xff]   ;;  %v1160_v31 = vld [vmem:[#allocation2 + $0xc4] ss:$8 sps:$4 sm:$0xff]  }
  0x17   :  { %v1162_v32 = vld [vmem:[#allocation2 + $0xc0] ss:$8 sps:$4 sm:$0xff]   ;;  %v1163_v33 = vld [vmem:[#allocation2 + $0xb4] ss:$8 sps:$4 sm:$0xff]   ;;  %v1165_v34 = vld [vmem:[#allocation2 + $0xb0] ss:$8 sps:$4 sm:$0xff]  }
  0x18   :  { %v1166_v35 = vld [vmem:[#allocation2 + $0xa4] ss:$8 sps:$4 sm:$0xff]   ;;  %v1168_v36 = vld [vmem:[#allocation2 + $0xa0] ss:$8 sps:$4 sm:$0xff]   ;;  %v1169_v37 = vld [vmem:[#allocation2 + $0x94] ss:$8 sps:$4 sm:$0xff]  }
  0x19   :  { %55 = vperm.xlu0 %1125, %v40_v8   ;;  %735 = vmatpush1.bf16.msra.mxu0 %v1135_v14  ;;  %v1171_v38 = vld [vmem:[#allocation2 + $0x90] ss:$8 sps:$4 sm:$0xff]   ;;  %v1172_v39 = vld [vmem:[#allocation2 + $0x84] ss:$8 sps:$4 sm:$0xff]   ;;  %v1174_v40 = vld [vmem:[#allocation2 + $0x80] ss:$8 sps:$4 sm:$0xff]  }
  0x1a   :  { %736 = vmatprep.subr.bf16.mxu0 %v1136_v15  ;;  %v1175_v41 = vld [vmem:[#allocation2 + $0x174] ss:$8 sps:$4 sm:$0xff]   ;;  %v1177_v42 = vld [vmem:[#allocation2 + $0x170] ss:$8 sps:$4 sm:$0xff]   ;;  %v1178_v43 = vld [vmem:[#allocation2 + $0x164] ss:$8 sps:$4 sm:$0xff]  }
  0x1b   :  { %965 = vmatprep.subr.bf16.mxu1 %v1175_v41  ;;  %v1180_v44 = vld [vmem:[#allocation2 + $0x160] ss:$8 sps:$4 sm:$0xff]   ;;  %v1181_v45 = vld [vmem:[#allocation2 + $0x154] ss:$8 sps:$4 sm:$0xff]   ;;  %v1183_v46 = vld [vmem:[#allocation2 + $0x150] ss:$8 sps:$4 sm:$0xff]  }
  0x1c   :  { %966 = vmatpush1.bf16.msra.mxu1 %v1177_v42  ;;  %v1184_v47 = vld [vmem:[#allocation2 + $0x144] ss:$8 sps:$4 sm:$0xff]   ;;  %v1186_v48 = vld [vmem:[#allocation2 + $0x140] ss:$8 sps:$4 sm:$0xff]   ;;  %v1187_v49 = vld [vmem:[#allocation2 + $0x134] ss:$8 sps:$4 sm:$0xff]  }
  0x1d   :  { %737 = vmatpush1.bf16.msra.mxu0 %v1138_v16  ;;  %967 = vmatprep.subr.bf16.mxu1 %v1178_v43  ;;  %v1189_v50 = vld [vmem:[#allocation2 + $0x130] ss:$8 sps:$4 sm:$0xff]   ;;  %v1190_v51 = vld [vmem:[#allocation2 + $0x124] ss:$8 sps:$4 sm:$0xff]   ;;  %v1023_v52 = vld [vmem:[%s1412_s1] ss:$0 sm:$0xff] }
  0x1e   :  { %738 = vmatprep.subr.bf16.mxu0 %v1139_v17  ;;  %v1192_v53 = vld [vmem:[#allocation2 + $0x120] ss:$8 sps:$4 sm:$0xff]   ;;  %v1287_v10 = vmov 683565275   ;;  %v1288_v14 = vmov 2475754826  }
  0x1f   :  { %v1289_v16 = vmov 2131351028  }
  0x20   :  { %968 = vmatpush1.bf16.msra.mxu1 %v1180_v44 }
  0x21   :  { %739 = vmatpush1.bf16.msra.mxu0 %v1141_v18  ;;  %969 = vmatprep.subr.bf16.mxu1 %v1181_v45  ;;  %v1290_v18 = vmov 2102212464  }
  0x22   :  { %740 = vmatprep.subr.bf16.mxu0 %v1142_v19 }
  0x24   :  { %970 = vmatpush1.bf16.msra.mxu1 %v1183_v46 }
  0x25   :  { %741 = vmatpush1.bf16.msra.mxu0 %v1144_v20  ;;  %971 = vmatprep.subr.bf16.mxu1 %v1184_v47  ;;  %v1291_v20 = vmov 920167782  }
  0x26   :  { %742 = vmatprep.subr.bf16.mxu0 %v1145_v21 }
  0x28   :  { %972 = vmatpush1.bf16.msra.mxu1 %v1186_v48 }
  0x29   :  { %743 = vmatpush1.bf16.msra.mxu0 %v1147_v22  ;;  %973 = vmatprep.subr.bf16.mxu1 %v1187_v49 }
  0x2a   :  { %744 = vmatprep.subr.bf16.mxu0 %v1148_v23 }
  0x2c   :  { %974 = vmatpush1.bf16.msra.mxu1 %v1189_v50 }
  0x2d   :  { %745 = vmatpush1.bf16.msra.mxu0 %v1150_v24  ;;  %975 = vmatprep.subr.bf16.mxu1 %v1190_v51 }
  0x2e   :  { %746 = vmatprep.subr.bf16.mxu0 %v1151_v25 }
  0x30   :  { %976 = vmatpush1.bf16.msra.mxu1 %v1192_v53 }
  0x31   :  { %747 = vmatpush2.bf16.msra.mxu0 %v1153_v26 }
  0x32   :  { %748 = vmatprep.subr.bf16.mxu0 %v1154_v27  ;;  %v1292_v27 = vmov 1326507024  }
  0x35   :  { %749 = vmatpush2.bf16.msra.mxu0 %v1156_v28 }
  0x36   :  { %750 = vmatprep.subr.bf16.mxu0 %v1157_v29 }
  0x39   :  { %751 = vmatpush2.bf16.msra.mxu0 %v1159_v30 }
  0x3a   :  { %752 = vmatprep.subr.bf16.mxu0 %v1160_v31 }
  0x3d   :  { %753 = vmatpush2.bf16.msra.mxu0 %v1162_v32 }
  0x3e   :  { %754 = vmatprep.subr.bf16.mxu0 %v1163_v33 }
  0x41   :  { %755 = vmatpush2.bf16.msra.mxu0 %v1165_v34 }
  0x42   :  { %756 = vmatprep.subr.bf16.mxu0 %v1166_v35 }
  0x45   :  { %757 = vmatpush2.bf16.msra.mxu0 %v1168_v36 }
  0x46   :  { %758 = vmatprep.subr.bf16.mxu0 %v1169_v37 }
  0x49   :  { %759 = vmatpush2.bf16.msra.mxu0 %v1171_v38 }
  0x4a   :  { %760 = vmatprep.subr.bf16.mxu0 %v1172_v39 }
  0x4d   :  { %761 = vmatpush2.bf16.msra.mxu0 %v1174_v40 }
  0x90   :  { %v44_v54 = vpop.permute.xlu0 %43 }
  0x91   :  { %v1328_v55 = vmul.f32 %v1023_v52, %v44_v54 }
  0x93   :  { %v59_v56 = vand.u32 2147483647, %v1328_v55  ;;  %v62_v57 = vand.u32 2139095040, %v1328_v55  ;;  %vm61_vm14 = vcmp.lt.s32.totalorder %v1328_v55, 0 }
  0x94   :  { %v56_v58 = vpop.permute.xlu0 %55 }
  0x95   :  { %v63_v59 = vshrl.u32 %v62_v57, 23  ;;  %v1332_v60 = vmul.f32 %v1023_v52, %v56_v58  ;;  %v66_v61 = vand.u32 8388607, %v59_v56  ;;  %vm1386_vm15 = vcmp.le.f32.partialorder %v59_v56, 0.7853982 }
  0x97   :  { %v1024_v62 = vadd.s32 4294967169, %v63_v59  ;;  %v269_v63 = vand.u32 2139095040, %v1332_v60  ;;  %v67_v1 = vor.u32 8388608, %v66_v61  ;;  %v266_v3 = vand.u32 2147483647, %v1332_v60 }
  0x99   :  { %v69_v0 = vadd.s32 1, %v1024_v62  ;;  %v270_v2 = vshrl.u32 %v269_v63, 23  ;;  %v1338_v8 = vshll.u32 %v67_v1, 8  ;;  %v273_v12 = vand.u32 8388607, %v266_v3 }
  0x9b   :  { %vm70_vm0 = vcmp.gt.s32.totalorder %v69_v0, 0  ;;  %v1032_v5 = vadd.s32 4294967169, %v270_v2  ;;  %v274_v42 = vor.u32 8388608, %v273_v12 }
  0x9c   :  { %v71_v4 = vsel %vm70_vm0, %v69_v0, 0  ;;  %vm268_vm0 = vcmp.lt.s32.totalorder %v1332_v60, 0 }
  0x9d   :  { %v72_v6 = vshrl.u32 %v71_v4, 5  ;;  %v73_v7 = vand.u32 31, %v71_v4  ;;  %v276_v13 = vadd.s32 1, %v1032_v5  ;;  %v314_v57 = vshll.u32 %v274_v42, 8 }
  0x9f   :  { %v74_v9 = vsub.s32 32, %v73_v7  ;;  %v76_v11 = vshll.u32 %v1287_v10, %v73_v7  ;;  %v79_v15 = vshll.u32 %v1288_v14, %v73_v7  ;;  %v82_v17 = vshll.u32 %v1289_v16, %v73_v7 }
  0xa0   :  { %v85_v19 = vshll.u32 %v1290_v18, %v73_v7  ;;  %v88_v21 = vshll.u32 %v1291_v20, %v73_v7  ;;  %vm91_vm1 = vcmp.lt.s32.totalorder %v72_v6, 1  ;;  %vm93_vm2 = vcmp.lt.s32.totalorder %v72_v6, 3 }
  0xa1   :  { %v77_v22 = vshrl.u32 %v1288_v14, %v74_v9  ;;  %v80_v23 = vshrl.u32 %v1289_v16, %v74_v9  ;;  %v83_v24 = vshrl.u32 %v1290_v18, %v74_v9  ;;  %v75_v25 = vshrl.u32 %v1287_v10, %v74_v9 }
  0xa2   :  { %v86_v26 = vshrl.u32 %v1291_v20, %v74_v9  ;;  %v89_v28 = vshrl.u32 %v1292_v27, %v74_v9  ;;  %vm277_vm3 = vcmp.gt.s32.totalorder %v276_v13, 0  ;;  %vm94_vm4 = vcmp.lt.s32.totalorder %v72_v6, 4 }
  0xa3   :  { %v78_v29 = vor.u32 %v77_v22, %v76_v11  ;;  %v81_v30 = vor.u32 %v80_v23, %v79_v15  ;;  %v84_v31 = vor.u32 %v83_v24, %v82_v17  ;;  %v278_v34 = vsel %vm277_vm3, %v276_v13, 0 }
  0xa4   :  { %v87_v32 = vor.u32 %v86_v26, %v85_v19  ;;  %v90_v33 = vor.u32 %v89_v28, %v88_v21  ;;  %vm92_vm5 = vcmp.lt.s32.totalorder %v72_v6, 2  ;;  %v280_v45 = vand.u32 31, %v278_v34 }
  0xa5   :  { %v95_v35 = vsel %vm91_vm1, %v75_v25, %v78_v29  ;;  %v96_v36 = vsel %vm94_vm4, %v84_v31, 2102212464  ;;  %v99_v37 = vsel %vm91_vm1, %v78_v29, %v81_v30  ;;  %v103_v38 = vsel %vm91_vm1, %v81_v30, %v84_v31 }
  0xa6   :  { %v97_v39 = vsel %vm93_vm2, %v81_v30, %v96_v36  ;;  %v100_v40 = vsel %vm94_vm4, %v87_v32, 920167782  ;;  %v104_v41 = vsel %vm94_vm4, %v90_v33, 1326507024  ;;  %v279_v53 = vshrl.u32 %v278_v34, 5 }
  0xa7   :  { %v101_v43 = vsel %vm93_vm2, %v84_v31, %v100_v40  ;;  %v105_v44 = vsel %vm93_vm2, %v87_v32, %v104_v41  ;;  %v98_v46 = vsel %vm92_vm5, %v95_v35, %v97_v39  ;;  %v281_v54 = vsub.s32 32, %v280_v45 }
  0xa8   :  { %v102_v47 = vsel %vm92_vm5, %v99_v37, %v101_v43  ;;  %v106_v48 = vsel %vm92_vm5, %v103_v38, %v105_v44  ;;  %v114_v58 = vmul.u32 %v1338_v8, %v98_v46  ;;  %v283_v59 = vshll.u32 %v1287_v10, %v280_v45 }
  0xa9   :  { %v1351_v49 = vmul.u32.u64.low %v1338_v8, %v106_v48  ;;  %v1352_v50 = vmul.u32.u64.high %v1338_v8, %v106_v48, %v1351_v49  ;;  %v1355_v51 = vmul.u32.u64.low %v1338_v8, %v102_v47  ;;  %v1356_v52 = vmul.u32.u64.high %v1338_v8, %v102_v47, %v1355_v51 }
  0xaa   :  { %v286_v61 = vshll.u32 %v1288_v14, %v280_v45  ;;  %v289_v62 = vshll.u32 %v1289_v16, %v280_v45  ;;  %v284_v63 = vshrl.u32 %v1288_v14, %v281_v54  ;;  %v287_v0 = vshrl.u32 %v1289_v16, %v281_v54 }
  0xab   :  { %v290_v1 = vshrl.u32 %v1290_v18, %v281_v54  ;;  %v292_v2 = vshll.u32 %v1290_v18, %v280_v45  ;;  %vm116_vm6 = vc.u32 %v1352_v50, %v1355_v51  ;;  %v117_v4 = vadd.s32 1, %v1356_v52 }
  0xac   :  { %v293_v5 = vshrl.u32 %v1291_v20, %v281_v54  ;;  %v295_v6 = vshll.u32 %v1291_v20, %v280_v45  ;;  %v285_v7 = vor.u32 %v284_v63, %v283_v59  ;;  %v288_v9 = vor.u32 %v287_v0, %v286_v61 }
  0xad   :  { %v291_v11 = vor.u32 %v290_v1, %v289_v62  ;;  %v296_v12 = vshrl.u32 %v1292_v27, %v281_v54  ;;  %v118_v8 = vsel %vm116_vm6, %v117_v4, %v1356_v52  ;;  %vm298_vm7 = vcmp.lt.s32.totalorder %v279_v53, 1 }
  0xae   :  { %v294_v13 = vor.u32 %v293_v5, %v292_v2  ;;  %vm301_vm8 = vcmp.lt.s32.totalorder %v279_v53, 4  ;;  %v119_v14 = vadd.s32 %v118_v8, %v114_v58  ;;  %vm300_vm9 = vcmp.lt.s32.totalorder %v279_v53, 3 }
  0xaf   :  { %v297_v15 = vor.u32 %v296_v12, %v295_v6  ;;  %v303_v16 = vsel %vm301_vm8, %v291_v11, 2102212464  ;;  %v282_v17 = vshrl.u32 %v1287_v10, %v281_v54  ;;  %v306_v18 = vsel %vm298_vm7, %v285_v7, %v288_v9 }
  0xb0   :  { %v307_v19 = vsel %vm301_vm8, %v294_v13, 920167782  ;;  %v310_v21 = vsel %vm298_vm7, %v288_v9, %v291_v11  ;;  %v120_v22 = vadd.s32 536870912, %v119_v14  ;;  %vm299_vm10 = vcmp.lt.s32.totalorder %v279_v53, 2 }
  0xb1   :  { %v308_v20 = vsel %vm300_vm9, %v291_v11, %v307_v19  ;;  %v311_v23 = vsel %vm301_vm8, %v297_v15, 1326507024  ;;  %v302_v24 = vsel %vm298_vm7, %v282_v17, %v285_v7  ;;  %v304_v25 = vsel %vm300_vm9, %v288_v9, %v303_v16  ;;  %v1208_v17 = vld [vmem:[#allocation2 + $0x1c4] ss:$8 sps:$4 sm:$0xff]  }
  0xb2   :  { %v309_v26 = vsel %vm299_vm10, %v306_v18, %v308_v20  ;;  %v312_v27 = vsel %vm300_vm9, %v294_v13, %v311_v23  ;;  %v1366_v28 = vshrl.u32 %v120_v22, 30  ;;  %v305_v34 = vsel %vm299_vm10, %v302_v24, %v304_v25 }
  0xb3   :  { %v313_v29 = vsel %vm299_vm10, %v310_v21, %v312_v27  ;;  %v1368_v30 = vmul.u32.u64.low %v314_v57, %v309_v26  ;;  %v1369_v31 = vmul.u32.u64.high %v314_v57, %v309_v26, %v1368_v30  ;;  %v321_v37 = vmul.u32 %v314_v57, %v305_v34 }
  0xb4   :  { %v1371_v32 = vmul.u32.u64.low %v314_v57, %v313_v29  ;;  %v1372_v33 = vmul.u32.u64.high %v314_v57, %v313_v29, %v1371_v32  ;;  %v122_v10 = vshll.u32 %v1366_v28, 30  ;;  %v115_v49 = vadd.s32 %v1355_v51, %v1352_v50 }
  0xb5   :  { %v324_v36 = vadd.s32 1, %v1369_v31  ;;  %v145_v23 = vsub.s32 4, %v1366_v28  ;;  %vm267_vm1 = vcmp.le.f32.partialorder %v266_v3, 0.7853982 }
  0xb6   :  { %v123_v35 = vsub.s32 %v119_v14, %v122_v10  ;;  %vm323_vm11 = vc.u32 %v1372_v33, %v1368_v30  ;;  %v322_v9 = vadd.s32 %v1368_v30, %v1372_v33 }
  0xb7   :  { %v325_v39 = vsel %vm323_vm11, %v324_v36, %v1369_v31  ;;  %v146_v26 = vsel %vm61_vm14, %v145_v23, %v1366_v28  ;;  %v1217_v23 = vld [vmem:[#allocation2 + $0x194] ss:$8 sps:$4 sm:$0xff]  }
  0xb8   :  { %v125_v38 = vsub.s32 0, %v123_v35  ;;  %v326_v40 = vadd.s32 %v325_v39, %v321_v37  ;;  %v148_v29 = vsel %vm1386_vm15, 0, %v146_v26  ;;  %v552_v26 = vlaneseq }
  0xb9   :  { %v255_v31 = vadd.s32 3, %v148_v29 }
  0xba   :  { %v1025_v41 = vmin.u32 %v125_v38, %v123_v35  ;;  %v327_v42 = vadd.s32 536870912, %v326_v40 }
  0xbb   :  { %v256_v3 = vand.u32 3, %v255_v31 }
  0xbc   :  { %v127_v43 = vclz %v1025_v41  ;;  %v328_v44 = vshrl.u32 %v327_v42, 30 }
  0xbd   :  { %vm258_vm4 = vcmp.eq.s32.totalorder %v256_v3, 0  ;;  %vm261_vm5 = vcmp.eq.s32.totalorder %v256_v3, 2  ;;  %vm257_vm7 = vcmp.lt.s32.totalorder %v256_v3, 2 }
  0xbe   :  { %v1026_v45 = vadd.s32 4294967294, %v127_v43  ;;  %v329_v46 = vshll.u32 %v328_v44, 30  ;;  %v352_v25 = vsub.s32 4, %v328_v44 }
  0xc0   :  { %vm1027_vm12 = vcmp.lt.s32.totalorder %v1026_v45, 0  ;;  %v330_v48 = vsub.s32 %v326_v40, %v329_v46  ;;  %v353_v30 = vsel %vm268_vm0, %v352_v25, %v328_v44  ;;  %v1220_v25 = vld [vmem:[#allocation2 + $0x184] ss:$8 sps:$4 sm:$0xff]  }
  0xc1   :  { %v130_v47 = vsel %vm1027_vm12, 0, %v1026_v45  ;;  %v355_v32 = vsel %vm267_vm1, 0, %v353_v30  ;;  %v548_v30 = vld [vmem:[%s1414_s3] sm:$0xf]  ;;  %s1293_s3 = smov [#allocation5]  }
  0xc2   :  { %v131_v52 = vsub.s32 32, %v130_v47  ;;  %v135_v53 = vsub.s32 4294967266, %v130_v47  ;;  %v332_v54 = vsub.s32 0, %v330_v48  ;;  %v132_v57 = vshll.u32 %v123_v35, %v130_v47  ;;  %s1014_s25 = sshll.u32 %s1293_s3, 4  ;;  %s1015_s25 = int_to_ptr.vmem [resolvable:$true] %s1014_s25 }
  0xc3   :  { %v462_v34 = vadd.s32 3, %v355_v32  ;;  %v152_v35 = vand.u32 3, %v148_v29  ;;  %v359_v38 = vand.u32 3, %v355_v32  ;;  %s1259_s26 = scalar_lea.vmem %s1015_s25, 256  ;;  %p1264_p6 = scmp.lt.s32.totalorder %s1015_s25, %s1015_s25 }
  0xc4   :  { %v133_v58 = vshrl.u32 %v115_v49, %v131_v52  ;;  %v136_v59 = vadd.s32 127, %v135_v53  ;;  %v1033_v61 = vmin.u32 %v332_v54, %v330_v48  ;;  %p1260_p5 = scmp.ne.s32.totalorder %s1015_s25, %s1259_s26  ;;  %p1265_p7 = scmp.lt.s32.totalorder %s1259_s26, %s1259_s26 }
  0xc5   :  { %v463_v39 = vand.u32 3, %v462_v34  ;;  %vm154_vm2 = vcmp.eq.s32.totalorder %v152_v35, 0  ;;  %vm157_vm3 = vcmp.eq.s32.totalorder %v152_v35, 2  ;;  %vm153_vm6 = vcmp.lt.s32.totalorder %v152_v35, 2 }
  0xc6   :  { %v134_v62 = vor.u32 %v133_v58, %v132_v57  ;;  %v137_v63 = vshll.u32 %v136_v59, 23  ;;  %v334_v0 = vclz %v1033_v61  ;;  %vm361_vm8 = vcmp.eq.s32.totalorder %v359_v38, 0  ;;  %p1266_p8 = por %p1265_p7, %p1264_p6 }
  0xc7   :  { %vm364_vm9 = vcmp.eq.s32.totalorder %v359_v38, 2  ;;  %vm465_vm10 = vcmp.eq.s32.totalorder %v463_v39, 0  ;;  %vm468_vm11 = vcmp.eq.s32.totalorder %v463_v39, 2  ;;  %vm360_vm12 = vcmp.lt.s32.totalorder %v359_v38, 2 }
  0xc8   :  { %v138_v1 = vor.u32 4788187, %v137_v63  ;;  %v1034_v2 = vadd.s32 4294967294, %v334_v0  ;;  %v141_v5 = vcvt.s32.f32 %v134_v62  ;;  %v477_v0 = vpop.permute.xlu1 %476  ;;  %p1267_p9 = pnand %p1266_p8, %p1260_p5 }
  0xca   :  { %v139_v4 = vand.u32 2147483647, %v138_v1  ;;  %vm1035_vm13 = vcmp.lt.s32.totalorder %v1034_v2, 0 }
  0xcb   :  { %v337_v7 = vsel %vm1035_vm13, 0, %v1034_v2  ;;  %vm464_vm13 = vcmp.lt.s32.totalorder %v463_v39, 2 }
  0xcc   :  { %v142_v6 = vmul.f32 %v141_v5, %v139_v4  ;;  %v338_v50 = vsub.s32 32, %v337_v7  ;;  %v342_v51 = vsub.s32 4294967266, %v337_v7  ;;  %v339_v12 = vshll.u32 %v330_v48, %v337_v7 }
  0xce   :  { %v143_v11 = vxor.u32 2147483648, %v142_v6  ;;  %v340_v8 = vshrl.u32 %v322_v9, %v338_v50  ;;  %v343_v13 = vadd.s32 127, %v342_v51  ;;  %v1195_v51 = vld [vmem:[#allocation2 + $0x110] ss:$8 sps:$4 sm:$0xff]  }
  0xd0   :  { %v144_v14 = vsel %vm61_vm14, %v143_v11, %v142_v6  ;;  %v341_v15 = vor.u32 %v340_v8, %v339_v12  ;;  %v344_v16 = vshll.u32 %v343_v13, 23  ;;  %vm151_vm14 = vweird.f32 %v1328_v55  ;;  %v1198_v11 = vld [vmem:[#allocation2 + $0x100] ss:$8 sps:$4 sm:$0xff]   ;;  %v1199_v12 = vld [vmem:[#allocation2 + $0x1f4] ss:$8 sps:$4 sm:$0xff]  }
  0xd1   :  { %v147_v18 = vsel %vm1386_vm15, %v1328_v55, %v144_v14  ;;  %vm358_vm15 = vweird.f32 %v1332_v60  ;;  %v1193_v55 = vld [vmem:[#allocation2 + $0x114] ss:$8 sps:$4 sm:$0xff]   ;;  %v1201_v8 = vld [vmem:[#allocation2 + $0x1f0] ss:$8 sps:$4 sm:$0xff]   ;;  %v1202_v13 = vld [vmem:[#allocation2 + $0x1e4] ss:$8 sps:$4 sm:$0xff]  }
  0xd2   :  { %v345_v19 = vor.u32 4788187, %v344_v16  ;;  %v348_v22 = vcvt.s32.f32 %v341_v15  ;;  %1223 = vcosq.f32 %v147_v18  ;;  %977 = vmatprep.subr.bf16.mxu1 %v1193_v55  ;;  %v1204_v14 = vld [vmem:[#allocation2 + $0x1e0] ss:$8 sps:$4 sm:$0xff]   ;;  %v1205_v15 = vld [vmem:[#allocation2 + $0x1d4] ss:$8 sps:$4 sm:$0xff]  }
  0xd3   :  { %1225 = vsinq.f32 %v147_v18  ;;  %978 = vmatpush1.bf16.msra.mxu1 %v1195_v51  ;;  %v1207_v16 = vld [vmem:[#allocation2 + $0x1d0] ss:$8 sps:$4 sm:$0xff]   ;;  %v1210_v18 = vld [vmem:[#allocation2 + $0x1c0] ss:$8 sps:$4 sm:$0xff]  }
  0xd4   :  { %v346_v21 = vand.u32 2147483647, %v345_v19  ;;  %v1211_v19 = vld [vmem:[#allocation2 + $0x1b4] ss:$8 sps:$4 sm:$0xff]  }
  0xd6   :  { %v349_v20 = vmul.f32 %v348_v22, %v346_v21  ;;  %v1213_v21 = vld [vmem:[#allocation2 + $0x1b0] ss:$8 sps:$4 sm:$0xff]   ;;  %v1214_v22 = vld [vmem:[#allocation2 + $0x1a4] ss:$8 sps:$4 sm:$0xff]  }
  0xd8   :  { %v350_v24 = vxor.u32 2147483648, %v349_v20 }
  0xda   :  { %v351_v56 = vsel %vm268_vm0, %v350_v24, %v349_v20  ;;  %v1216_v20 = vld [vmem:[#allocation2 + $0x1a0] ss:$8 sps:$4 sm:$0xff]   ;;  %v1219_v24 = vld [vmem:[#allocation2 + $0x190] ss:$8 sps:$4 sm:$0xff]  }
  0xdb   :  { %v354_v27 = vsel %vm267_vm1, %v1332_v60, %v351_v56  ;;  %v1196_v60 = vld [vmem:[#allocation2 + $0x104] ss:$8 sps:$4 sm:$0xff]   ;;  %v1222_v56 = vld [vmem:[#allocation2 + $0x180] ss:$8 sps:$4 sm:$0xff]  }
  0xdc   :  { %1227 = vcosq.f32 %v354_v27  ;;  %979 = vmatprep.subr.bf16.mxu1 %v1196_v60 }
  0xdd   :  { %1229 = vsinq.f32 %v354_v27  ;;  %980 = vmatpush1.bf16.msra.mxu1 %v1198_v11  ;;  %v553_v27 = vshrl.u32 %v552_v26, 7 }
  0xde   :  { %981 = vmatprep.subr.bf16.mxu1 %v1199_v12 }
  0xdf   :  { %v1224_v33 = vpop.eup %1223  ;;  %v554_v29 = vsub.s32 0, %v553_v27  ;;  %v558_v31 = vsub.s32 2, %v553_v27 }
  0xe0   :  { %v1226_v10 = vpop.eup %1225  ;;  %v158_v37 = vxor.u32 2147483648, %v1224_v33 }
  0xe1   :  { %v155_v36 = vxor.u32 2147483648, %v1226_v10  ;;  %982 = vmatpush2.bf16.msra.mxu1 %v1201_v8  ;;  %v555_v32 = vrot.slane %v548_v30, %v554_v29 }
  0xe2   :  { %v159_v41 = vsel %vm157_vm3, %v158_v37, %v1226_v10  ;;  %v263_v43 = vsel %vm261_vm5, %v158_v37, %v1226_v10  ;;  %983 = vmatprep.subr.bf16.mxu1 %v1202_v13 }
  0xe3   :  { %v156_v40 = vsel %vm154_vm2, %v1224_v33, %v155_v36  ;;  %v260_v42 = vsel %vm258_vm4, %v1224_v33, %v155_v36  ;;  %v559_v33 = vrot.slane %v548_v30, %v558_v31  ;;  %v565_v10 = vrot.slane %v555_v32, %v554_v29 }
  0xe4   :  { %v160_v47 = vsel %vm153_vm6, %v156_v40, %v159_v41  ;;  %v264_v48 = vsel %vm257_vm7, %v260_v42, %v263_v43 }
  0xe5   :  { %v161_v59 = vsel %vm151_vm14, nan, %v160_v47  ;;  %v265_v61 = vsel %vm151_vm14, nan, %v264_v48  ;;  %984 = vmatpush2.bf16.msra.mxu1 %v1204_v14  ;;  %v569_v34 = vrot.slane %v559_v33, %v554_v29 }
  0xe6   :  { %985 = vmatprep.subr.bf16.mxu1 %v1205_v15 }
  0xe9   :  { %v1228_v28 = vpop.eup %1227  ;;  %986 = vmatpush2.bf16.msra.mxu1 %v1207_v16 }
  0xea   :  { %v1230_v44 = vpop.eup %1229  ;;  %v365_v45 = vxor.u32 2147483648, %v1228_v28  ;;  %987 = vmatprep.subr.bf16.mxu1 %v1208_v17 }
  0xeb   :  { %v362_v46 = vxor.u32 2147483648, %v1230_v44 }
  0xec   :  { %v366_v49 = vsel %vm364_vm9, %v365_v45, %v1230_v44  ;;  %v470_v52 = vsel %vm468_vm11, %v365_v45, %v1230_v44 }
  0xed   :  { %v363_v53 = vsel %vm361_vm8, %v1228_v28, %v362_v46  ;;  %v467_v54 = vsel %vm465_vm10, %v1228_v28, %v362_v46  ;;  %988 = vmatpush2.bf16.msra.mxu1 %v1210_v18 }
  0xee   :  { %v367_v57 = vsel %vm360_vm12, %v363_v53, %v366_v49  ;;  %v471_v58 = vsel %vm464_vm13, %v467_v54, %v470_v52  ;;  %989 = vmatprep.subr.bf16.mxu1 %v1211_v19  ;;  %v789_v53 = vsub.s32 1, %v553_v27  ;;  %v793_v54 = vsub.s32 3, %v553_v27 }
  0xef   :  { %v368_v62 = vsel %vm358_vm15, nan, %v367_v57  ;;  %v472_v63 = vsel %vm358_vm15, nan, %v471_v58 }
  0xf0   :  { %v473_v1 = vsub.f32 %v368_v62, %v161_v59  ;;  %v481_v2 = vsub.f32 %v472_v63, %v265_v61  ;;  %v790_v57 = vrot.slane %v548_v30, %v789_v53  ;;  %v794_v58 = vrot.slane %v548_v30, %v793_v54 }
  0xf1   :  { %990 = vmatpush2.bf16.msra.mxu1 %v1213_v21 }
  0xf2   :  { %v479_v4 = vmul.f32 %v477_v0, %v473_v1  ;;  %v482_v5 = vmul.f32 %v481_v2, %v477_v0  ;;  %991 = vmatprep.subr.bf16.mxu1 %v1214_v22 }
  0xf4   :  { %v480_v6 = vadd.f32 %v479_v4, %v161_v59  ;;  %v483_v7 = vadd.f32 %v482_v5, %v265_v61  ;;  %v800_v59 = vrot.slane %v790_v57, %v789_v53  ;;  %v804_v61 = vrot.slane %v794_v58, %v789_v53 }
  0xf5   :  { %992 = vmatpush2.bf16.msra.mxu1 %v1216_v20 }
  0xf6   :  { %v549_v9 = vpack.c.bf16 %v480_v6, %v480_v6  ;;  %v550_v50 = vpack.c.bf16 %v483_v7, %v483_v7  ;;  %993 = vmatprep.subr.bf16.mxu1 %v1217_v23 }
  0xf8   :  { %762 = vmatprep.mubr.bf16.mxu0 %v550_v50 }
  0xf9   :  { %763 = vmatmul.mubr.bf16.vlgmr.msra.gmra.mxu0 %v549_v9  ;;  %994 = vmatpush2.bf16.msra.mxu1 %v1219_v24 }
  0xfa   :  { %995 = vmatprep.subr.bf16.mxu1 %v1220_v25 }
  0xfd   :  { %996 = vmatpush2.bf16.msra.mxu1 %v1222_v56 }
 0x1b9   :  { %v764_v35 = vpop.f32.mrf.mxu0 }
 0x1ba   :  { %v765_v3 = vadd.f32 %v764_v35, %v565_v10 }
 0x1bb   :  { %v766_v36 = vpop.f32.mrf.mxu0 }
 0x1bc   :  { %v1072_v37 = vmul.f32 -1.442695, %v765_v3  ;;  %v767_v38 = vadd.f32 %v766_v36, %v569_v34 }
 0x1bd   :  { %v768_v39 = vpop.f32.mrf.mxu0 }
 0x1be   :  { %1231 = vpow2.f32 %v1072_v37  ;;  %v1073_v28 = vmul.f32 -1.442695, %v767_v38 }
 0x1bf   :  { %v769_v40 = vpop.f32.mrf.mxu0 }
 0x1c0   :  { %1233 = vpow2.f32 %v1073_v28 }
 0x1cb   :  { %v1232_v41 = vpop.eup %1231 }
 0x1cc   :  { %v777_v42 = vadd.f32 1.0, %v1232_v41 }
 0x1cd   :  { %v1234_v43 = vpop.eup %1233 }
 0x1ce   :  { %1235 = vrcp.f32 %v777_v42  ;;  %v778_v44 = vadd.f32 1.0, %v1234_v43 }
 0x1d0   :  { %1237 = vrcp.f32 %v778_v44 }
 0x1db   :  { %v1236_v45 = vpop.eup %1235 }
 0x1dc   :  { %v783_v47 = vmul.f32 %v1236_v45, %v765_v3 }
 0x1dd   :  { %v1238_v46 = vpop.eup %1237 }
 0x1de   :  { %v784_v48 = vmul.f32 %v1238_v46, %v767_v38  ;;  %v785_v52 = vpack.c.bf16 %v783_v47, %v783_v47 }
 0x1e0   :  { %v786_v49 = vpack.c.bf16 %v784_v48, %v784_v48 }
 0x1e2   :  { %997 = vmatprep.mubr.bf16.mxu1 %v786_v49 }
 0x1e3   :  { %998 = vmatmul.mubr.bf16.vlgmr.msra.gmra.mxu1 %v785_v52 }
 0x2a3   :  { %v999_v62 = vpop.f32.mrf.mxu1 }
 0x2a4   :  { %v1000_v63 = vadd.f32 %v999_v62, %v800_v59 }
 0x2a5   :  { %v1001_v0 = vpop.f32.mrf.mxu1 }
 0x2a6   :  { %1006 = vst [vmem:[#allocation5] sm:$0xff] %v1000_v63  ;;  %v1002_v1 = vadd.f32 %v1001_v0, %v804_v61 }
 0x2a7   :  { %v1003_v2 = vpop.f32.mrf.mxu1 }
 0x2a8   :  { %1007 = vst [vmem:[#allocation5 + $0x8] sm:$0xff] %v1002_v1 }
 0x2a9   :  { %v1004_v4 = vpop.f32.mrf.mxu1 }
 0x2aa   :  { %1270 = shalt.err (!%p1267_p9)
}
 0x2ab   :  { %1017 = dma.vmem_to_hbm [thread:$0]  %s1015_s25, 256, %s1415_s4, [#allocation4]  }
 0x2ac   :  { %1281 = dma.done.wait [#allocation4], 256  }
 0x2ad   :  { %1282 = vsyncadd [#allocation4], 4294967040 }
 0x2ae   :  { %1021 = vsyncpa [#allocation3], 1 }
 0x2af   :  { %1022 = vsyncpa [#allocation4], 1 }

</bundles_post_ra>
